<compile_context>
chip_gen: v7x
topology: tpu7x:2x2x1
jax: 0.10.0
libtpu: 0.0.40
codegen_flags: <defaults>
</compile_context>

<pallas_src>
import functools

import jax
import jax.numpy as jnp
from jax.experimental import pallas as pl
from jax.experimental.pallas import tpu as pltpu


_DIMS = ((8, 128), (128, 64), (64, 32), (32, 2))  # (fan_in, fan_out) per layer


def dnn_kernel(x_ref, w1_ref, b1_ref, w2_ref, b2_ref, w3_ref, b3_ref,
               w4_ref, b4_ref, o_ref):
    """Full MLP forward for one batch tile.

    x_ref: (Bt, 8) f32, batch-major as stored in HBM (no wrapper transpose).
    w*_ref: (out, in) bf16 (PyTorch layout, pre-cast once in the wrapper).
    b*_ref: (out, 1) f32.
    Compute is feature-major (batch on the lane axis):
      h1 = relu(W1 @ x^T + b1)   (128, Bt)
      h2 = relu(W2 @ h1 + b2)    (64, Bt)
      h3 = relu(W3 @ h2 + b3)    (32, Bt)
      logits = W4 @ h3 + b4      (2, Bt)
      p1 = sigmoid(logits[1] - logits[0]); p0 = 1 - p1   (exact normalization)
    """
    # TODO(synk): training-mode dropout (p=0.1) omitted; eval-mode identity used.
    x_bf = x_ref[...].astype(jnp.bfloat16)               # (Bt, 8)

    # Layer 1: contract both operands over their last (fan-in) axis -> (128, Bt).
    # bf16 MXU matmul, f32 accumulation; bias + ReLU in f32.
    h1 = jax.lax.dot_general(
        w1_ref[...], x_bf, (((1,), (1,)), ((), ())),
        preferred_element_type=jnp.float32) + b1_ref[...]
    h1 = jnp.maximum(h1, 0.0)

    h2 = jnp.dot(w2_ref[...], h1.astype(jnp.bfloat16),
                 preferred_element_type=jnp.float32) + b2_ref[...]
    h2 = jnp.maximum(h2, 0.0)

    h3 = jnp.dot(w3_ref[...], h2.astype(jnp.bfloat16),
                 preferred_element_type=jnp.float32) + b3_ref[...]
    h3 = jnp.maximum(h3, 0.0)

    logits = jnp.dot(w4_ref[...], h3.astype(jnp.bfloat16),
                     preferred_element_type=jnp.float32) + b4_ref[...]  # (2, Bt)

    # 2-class softmax == sigmoid of the logit difference: exactly normalized,
    # no cross-sublane reductions (XLU) and a single exp (EUP).  Numerically
    # stable without max-subtraction (exp overflow -> inf -> p1 saturates).
    d = logits[1:2, :] - logits[0:1, :]                   # (1, Bt) f32
    p1 = 1.0 / (1.0 + jnp.exp(-d))
    p0 = 1.0 - p1
    o_ref[0:1, :] = p0.astype(o_ref.dtype)
    o_ref[1:2, :] = p1.astype(o_ref.dtype)


def _pick_batch_tile(B):
    """Pick the batch (lane) tile.

    VMEM is a non-issue here (peak well under a few MiB on every generation);
    the real constraints are (a) vreg residency of the (128,Bt) intermediate
    (prefer Bt <= 512 so bf16/f32 activations don't spill through the single
    vst slot) and (b) an even grid step count >= 4 so both v7x TensorCores get
    balanced, pipelined work under dimension_semantics=("parallel",).
    """
    if B % 128 != 0:
        return B                       # small/odd batch: one (lane-masked) block
    candidates = (512, 1024, 256, 128)
    for t in candidates:               # even step count >= 4 (balanced megacore)
        if B % t == 0 and (B // t) >= 4 and (B // t) % 2 == 0:
            return t
    for t in candidates:               # even step count >= 2
        if B % t == 0 and (B // t) >= 2 and (B // t) % 2 == 0:
            return t
    for t in candidates:               # whatever divides
        if B % t == 0:
            return t
    return B


@functools.partial(jax.jit, static_argnames=("batch_tile",))
def dnn_forward(x, params, batch_tile=None):
    B, f_in = x.shape
    assert f_in == 8
    w1, b1, w2, b2, w3, b3, w4, b4 = params

    bt = _pick_batch_tile(B) if batch_tile is None else batch_tile
    assert B % bt == 0

    # Cast weights to bf16 once (biases stay f32; bias/ReLU/softmax run in f32).
    w1b, w2b, w3b, w4b = (w.astype(jnp.bfloat16) for w in (w1, w2, w3, w4))

    def whole(a):
        # Constant block index -> fetched once, kept VMEM-resident across steps.
        return pl.BlockSpec(a.shape, lambda i: (0,) * a.ndim)

    flops = 2 * B * sum(fi * fo for fi, fo in _DIMS)
    weight_bytes = sum(fi * fo * 2 + fo * 4 for fi, fo in _DIMS)  # bf16 W, f32 b
    cost = pl.CostEstimate(
        flops=flops,
        transcendentals=B,                         # one exp per row (sigmoid)
        bytes_accessed=B * (8 + 2) * 4 + weight_bytes,
    )

    grid = (B // bt,)
    out_t = pl.pallas_call(
        dnn_kernel,
        out_shape=jax.ShapeDtypeStruct((2, B), jnp.float32),
        grid_spec=pltpu.PrefetchScalarGridSpec(
            num_scalar_prefetch=0,
            grid=grid,
            in_specs=[
                pl.BlockSpec((bt, 8), lambda i: (i, 0)),   # x tile, natural layout
                whole(w1b), whole(b1),
                whole(w2b), whole(b2),
                whole(w3b), whole(b3),
                whole(w4b), whole(b4),
            ],
            out_specs=pl.BlockSpec((2, bt), lambda i: (0, i)),  # lane-dense out
        ),
        compiler_params=pltpu.CompilerParams(
            dimension_semantics=("parallel",)),
        cost_estimate=cost,
    )(x, w1b, b1, w2b, b2, w3b, b3, w4b, b4)

    return out_t.T  # (B, 2); tiny layout flip, kernel stores stay unmasked


def init_params(key):
    """PyTorch nn.Linear default init: U(-1/sqrt(fan_in), 1/sqrt(fan_in)).
    Weights stored as (out, in) (PyTorch layout); biases as (out, 1)."""
    params = []
    for fan_in, fan_out in _DIMS:
        key, kw, kb = jax.random.split(key, 3)
        bound = 1.0 / jnp.sqrt(float(fan_in))
        w = jax.random.uniform(kw, (fan_out, fan_in), jnp.float32, -bound, bound)
        b = jax.random.uniform(kb, (fan_out, 1), jnp.float32, -bound, bound)
        params.extend([w, b])
    return tuple(params)


def dnn_reference(x, params, compute_dtype=jnp.float32):
    """Plain-JAX reference (batch-major, PyTorch weights).

    compute_dtype=bfloat16 mirrors the kernel's matmul precision (bf16 inputs,
    f32 accumulation, f32 bias/ReLU/softmax) for a tight numerical check.
    """
    w1, b1, w2, b2, w3, b3, w4, b4 = params

    def lin(h, w, b):
        y = jnp.dot(h.astype(compute_dtype), w.T.astype(compute_dtype),
                    preferred_element_type=jnp.float32)
        return y.astype(jnp.float32) + b.T

    h = jnp.maximum(lin(x, w1, b1), 0.0)
    h = jnp.maximum(lin(h, w2, b2), 0.0)
    h = jnp.maximum(lin(h, w3, b3), 0.0)
    logits = lin(h, w4, b4)
    return jax.nn.softmax(logits, axis=1)


if __name__ == "__main__":
    key = jax.random.PRNGKey(0)
    key, kx = jax.random.split(key)

    B = 256  # small, gives two lane-dense (128-wide) grid steps
    x = jax.random.normal(kx, (B, 8), jnp.float32)

    params = init_params(key)

    out = dnn_forward(x, params)
    out = jax.block_until_ready(out)

    assert out.shape == (B, 2)
    # Exact normalization by construction (p0 = 1 - p1).
    assert jnp.allclose(jnp.sum(out, axis=1), 1.0, atol=1e-6)
    # Tight check vs a reference with matching bf16-matmul / f32-accum numerics.
    ref_bf16 = dnn_reference(x, params, compute_dtype=jnp.bfloat16)
    assert jnp.allclose(out, ref_bf16, atol=2e-3, rtol=2e-3), "mismatch vs bf16 ref"
    # Loose sanity check vs the pure-f32 reference (bf16 matmul rounding).
    ref_f32 = dnn_reference(x, params)
    assert jnp.allclose(out, ref_f32, atol=5e-2, rtol=5e-2), "mismatch vs f32 ref"

    print("KERNEL_OK")
</pallas_src>

<mosaic_0001>
module attributes {stable_mosaic.version = 11 : i64} {
  func.func @dnn_kernel(%arg0: i32, %arg1: memref<128x8xf32, #tpu.memory_space<vmem>>, %arg2: memref<128x8xbf16, #tpu.memory_space<vmem>>, %arg3: memref<128x1xf32, #tpu.memory_space<vmem>>, %arg4: memref<64x128xbf16, #tpu.memory_space<vmem>>, %arg5: memref<64x1xf32, #tpu.memory_space<vmem>>, %arg6: memref<32x64xbf16, #tpu.memory_space<vmem>>, %arg7: memref<32x1xf32, #tpu.memory_space<vmem>>, %arg8: memref<2x32xbf16, #tpu.memory_space<vmem>>, %arg9: memref<2x1xf32, #tpu.memory_space<vmem>>, %arg10: memref<2x128xf32, #tpu.memory_space<vmem>>) attributes {dimension_semantics = [#tpu.dimension_semantics<parallel>], iteration_bounds = array<i64: 2>, scalar_prefetch = 0 : i64, scratch_operands = 0 : i64, tpu.core_type = #tpu.core_type<tc>, window_params = [{transform_indices = @transform_0, window_bounds = array<i64: 128, 8>}, {pipeline_mode = #tpu.pipeline_mode<synchronous>, transform_indices = @transform_1, window_bounds = array<i64: 128, 8>}, {pipeline_mode = #tpu.pipeline_mode<synchronous>, transform_indices = @transform_2, window_bounds = array<i64: 128, 1>}, {pipeline_mode = #tpu.pipeline_mode<synchronous>, transform_indices = @transform_3, window_bounds = array<i64: 64, 128>}, {pipeline_mode = #tpu.pipeline_mode<synchronous>, transform_indices = @transform_4, window_bounds = array<i64: 64, 1>}, {pipeline_mode = #tpu.pipeline_mode<synchronous>, transform_indices = @transform_5, window_bounds = array<i64: 32, 64>}, {pipeline_mode = #tpu.pipeline_mode<synchronous>, transform_indices = @transform_6, window_bounds = array<i64: 32, 1>}, {pipeline_mode = #tpu.pipeline_mode<synchronous>, transform_indices = @transform_7, window_bounds = array<i64: 2, 32>}, {pipeline_mode = #tpu.pipeline_mode<synchronous>, transform_indices = @transform_8, window_bounds = array<i64: 2, 1>}, {transform_indices = @transform_9, window_bounds = array<i64: 2, 128>}]} {
    %c0 = arith.constant 0 : index
    %c0_0 = arith.constant 0 : index
    %0 = vector.load %arg1[%c0, %c0_0] : memref<128x8xf32, #tpu.memory_space<vmem>>, vector<128x8xf32>
    %1 = arith.truncf %0 : vector<128x8xf32> to vector<128x8xbf16>
    %c0_1 = arith.constant 0 : index
    %c0_2 = arith.constant 0 : index
    %2 = vector.load %arg2[%c0_1, %c0_2] : memref<128x8xbf16, #tpu.memory_space<vmem>>, vector<128x8xbf16>
    %cst = arith.constant dense<0.000000e+00> : vector<128x128xf32>
    %3 = tpu.matmul %2, %1, %cst {dimension_numbers = #tpu.dot_dimension_numbers<[1], [1], [0], [0], [0, 0, 1, 0], [], []>} : vector<128x8xbf16>, vector<128x8xbf16>, vector<128x128xf32> -> vector<128x128xf32>
    %c0_3 = arith.constant 0 : index
    %c0_4 = arith.constant 0 : index
    %4 = vector.load %arg3[%c0_3, %c0_4] : memref<128x1xf32, #tpu.memory_space<vmem>>, vector<128x1xf32>
    %5 = vector.broadcast %4 : vector<128x1xf32> to vector<128x128xf32>
    %6 = arith.addf %3, %5 : vector<128x128xf32>
    %cst_5 = arith.constant 0.000000e+00 : f32
    %7 = vector.broadcast %cst_5 : f32 to vector<128x128xf32>
    %8 = arith.maximumf %6, %7 : vector<128x128xf32>
    %c0_6 = arith.constant 0 : index
    %c0_7 = arith.constant 0 : index
    %9 = vector.load %arg4[%c0_6, %c0_7] : memref<64x128xbf16, #tpu.memory_space<vmem>>, vector<64x128xbf16>
    %10 = arith.truncf %8 : vector<128x128xf32> to vector<128x128xbf16>
    %cst_8 = arith.constant dense<0.000000e+00> : vector<64x128xf32>
    %11 = tpu.matmul %9, %10, %cst_8 {dimension_numbers = #tpu.dot_dimension_numbers<[1], [0], [0], [1], [0, 0, 1, 1], [], []>} : vector<64x128xbf16>, vector<128x128xbf16>, vector<64x128xf32> -> vector<64x128xf32>
    %c0_9 = arith.constant 0 : index
    %c0_10 = arith.constant 0 : index
    %12 = vector.load %arg5[%c0_9, %c0_10] : memref<64x1xf32, #tpu.memory_space<vmem>>, vector<64x1xf32>
    %13 = vector.broadcast %12 : vector<64x1xf32> to vector<64x128xf32>
    %14 = arith.addf %11, %13 : vector<64x128xf32>
    %cst_11 = arith.constant 0.000000e+00 : f32
    %15 = vector.broadcast %cst_11 : f32 to vector<64x128xf32>
    %16 = arith.maximumf %14, %15 : vector<64x128xf32>
    %c0_12 = arith.constant 0 : index
    %c0_13 = arith.constant 0 : index
    %17 = vector.load %arg6[%c0_12, %c0_13] : memref<32x64xbf16, #tpu.memory_space<vmem>>, vector<32x64xbf16>
    %18 = arith.truncf %16 : vector<64x128xf32> to vector<64x128xbf16>
    %cst_14 = arith.constant dense<0.000000e+00> : vector<32x128xf32>
    %19 = tpu.matmul %17, %18, %cst_14 {dimension_numbers = #tpu.dot_dimension_numbers<[1], [0], [0], [1], [0, 0, 1, 1], [], []>} : vector<32x64xbf16>, vector<64x128xbf16>, vector<32x128xf32> -> vector<32x128xf32>
    %c0_15 = arith.constant 0 : index
    %c0_16 = arith.constant 0 : index
    %20 = vector.load %arg7[%c0_15, %c0_16] : memref<32x1xf32, #tpu.memory_space<vmem>>, vector<32x1xf32>
    %21 = vector.broadcast %20 : vector<32x1xf32> to vector<32x128xf32>
    %22 = arith.addf %19, %21 : vector<32x128xf32>
    %cst_17 = arith.constant 0.000000e+00 : f32
    %23 = vector.broadcast %cst_17 : f32 to vector<32x128xf32>
    %24 = arith.maximumf %22, %23 : vector<32x128xf32>
    %c0_18 = arith.constant 0 : index
    %c0_19 = arith.constant 0 : index
    %25 = vector.load %arg8[%c0_18, %c0_19] : memref<2x32xbf16, #tpu.memory_space<vmem>>, vector<2x32xbf16>
    %26 = arith.truncf %24 : vector<32x128xf32> to vector<32x128xbf16>
    %cst_20 = arith.constant dense<0.000000e+00> : vector<2x128xf32>
    %27 = tpu.matmul %25, %26, %cst_20 {dimension_numbers = #tpu.dot_dimension_numbers<[1], [0], [0], [1], [0, 0, 1, 1], [], []>} : vector<2x32xbf16>, vector<32x128xbf16>, vector<2x128xf32> -> vector<2x128xf32>
    %c0_21 = arith.constant 0 : index
    %c0_22 = arith.constant 0 : index
    %28 = vector.load %arg9[%c0_21, %c0_22] : memref<2x1xf32, #tpu.memory_space<vmem>>, vector<2x1xf32>
    %29 = vector.broadcast %28 : vector<2x1xf32> to vector<2x128xf32>
    %30 = arith.addf %27, %29 : vector<2x128xf32>
    %31 = vector.extract_strided_slice %30 {offsets = [1, 0], sizes = [1, 128], strides = [1, 1]} : vector<2x128xf32> to vector<1x128xf32>
    %32 = vector.extract_strided_slice %30 {offsets = [0, 0], sizes = [1, 128], strides = [1, 1]} : vector<2x128xf32> to vector<1x128xf32>
    %33 = arith.subf %31, %32 : vector<1x128xf32>
    %cst_23 = arith.constant 0.000000e+00 : f32
    %34 = vector.broadcast %cst_23 : f32 to vector<1x128xf32>
    %35 = arith.subf %34, %33 : vector<1x128xf32>
    %36 = math.exp %35 : vector<1x128xf32>
    %cst_24 = arith.constant 1.000000e+00 : f32
    %37 = vector.broadcast %cst_24 : f32 to vector<1x128xf32>
    %38 = arith.addf %37, %36 : vector<1x128xf32>
    %cst_25 = arith.constant 1.000000e+00 : f32
    %39 = vector.broadcast %cst_25 : f32 to vector<1x128xf32>
    %40 = arith.divf %39, %38 : vector<1x128xf32>
    %cst_26 = arith.constant 1.000000e+00 : f32
    %41 = vector.broadcast %cst_26 : f32 to vector<1x128xf32>
    %42 = arith.subf %41, %40 : vector<1x128xf32>
    %c0_27 = arith.constant 0 : index
    %c0_28 = arith.constant 0 : index
    %43 = vector.load %arg10[%c0_27, %c0_28] : memref<2x128xf32, #tpu.memory_space<vmem>>, vector<1x128xf32>
    tpu.vector_store %arg10[%c0_27, %c0_28], %42 {strides = array<i32>} : memref<2x128xf32, #tpu.memory_space<vmem>>, vector<1x128xf32>,
    %c1 = arith.constant 1 : index
    %c0_29 = arith.constant 0 : index
    %44 = vector.load %arg10[%c1, %c0_29] : memref<2x128xf32, #tpu.memory_space<vmem>>, vector<1x128xf32>
    tpu.vector_store %arg10[%c1, %c0_29], %40 {strides = array<i32>} : memref<2x128xf32, #tpu.memory_space<vmem>>, vector<1x128xf32>,
    return
  }
  func.func @transform_0(%arg0: i32) -> (i32, i32) {
    %c0_i32 = arith.constant 0 : i32
    %c0_i32_0 = arith.constant 0 : i32
    return %arg0, %c0_i32 : i32, i32
  }
  func.func @transform_1(%arg0: i32) -> (i32, i32) {
    %c0_i32 = arith.constant 0 : i32
    %c0_i32_0 = arith.constant 0 : i32
    %c0_i32_1 = arith.constant 0 : i32
    return %c0_i32, %c0_i32_0 : i32, i32
  }
  func.func @transform_2(%arg0: i32) -> (i32, i32) {
    %c0_i32 = arith.constant 0 : i32
    %c0_i32_0 = arith.constant 0 : i32
    %c0_i32_1 = arith.constant 0 : i32
    return %c0_i32, %c0_i32_0 : i32, i32
  }
  func.func @transform_3(%arg0: i32) -> (i32, i32) {
    %c0_i32 = arith.constant 0 : i32
    %c0_i32_0 = arith.constant 0 : i32
    %c0_i32_1 = arith.constant 0 : i32
    return %c0_i32, %c0_i32_0 : i32, i32
  }
  func.func @transform_4(%arg0: i32) -> (i32, i32) {
    %c0_i32 = arith.constant 0 : i32
    %c0_i32_0 = arith.constant 0 : i32
    %c0_i32_1 = arith.constant 0 : i32
    return %c0_i32, %c0_i32_0 : i32, i32
  }
  func.func @transform_5(%arg0: i32) -> (i32, i32) {
    %c0_i32 = arith.constant 0 : i32
    %c0_i32_0 = arith.constant 0 : i32
    %c0_i32_1 = arith.constant 0 : i32
    return %c0_i32, %c0_i32_0 : i32, i32
  }
  func.func @transform_6(%arg0: i32) -> (i32, i32) {
    %c0_i32 = arith.constant 0 : i32
    %c0_i32_0 = arith.constant 0 : i32
    %c0_i32_1 = arith.constant 0 : i32
    return %c0_i32, %c0_i32_0 : i32, i32
  }
  func.func @transform_7(%arg0: i32) -> (i32, i32) {
    %c0_i32 = arith.constant 0 : i32
    %c0_i32_0 = arith.constant 0 : i32
    %c0_i32_1 = arith.constant 0 : i32
    return %c0_i32, %c0_i32_0 : i32, i32
  }
  func.func @transform_8(%arg0: i32) -> (i32, i32) {
    %c0_i32 = arith.constant 0 : i32
    %c0_i32_0 = arith.constant 0 : i32
    %c0_i32_1 = arith.constant 0 : i32
    return %c0_i32, %c0_i32_0 : i32, i32
  }
  func.func @transform_9(%arg0: i32) -> (i32, i32) {
    %c0_i32 = arith.constant 0 : i32
    %c0_i32_0 = arith.constant 0 : i32
    return %c0_i32, %arg0 : i32, i32
  }
}

</mosaic_0001>

<bundles_post_ra>
// kernel: dnn_forward.1
= control target key start
LH: loop header
LB: loop body
LE: loop exit
PB: predicated region body
PF: predicated region fallthrough
CT: control target
= control target key end

     0   :  { %14 = vsyncpa [#allocation3], 0  ;;  %s1686_s0 = inlined_call_operand.vmem [shape: f32[256,8], index: 0, kind: input, shape index: {}]   ;;  %s1687_s1 = inlined_call_operand.vmem [shape: bf16[128,8], index: 1, kind: input, shape index: {}]   ;;  %s1688_s2 = inlined_call_operand.vmem [shape: f32[128,1], index: 2, kind: input, shape index: {}]   ;;  %s1689_s3 = inlined_call_operand.vmem [shape: bf16[64,128], index: 3, kind: input, shape index: {}]   ;;  %s1690_s4 = inlined_call_operand.vmem [shape: f32[64,1], index: 4, kind: input, shape index: {}]   ;;  %s1691_s5 = inlined_call_operand.vmem [shape: bf16[32,64], index: 5, kind: input, shape index: {}]   ;;  %s1692_s6 = inlined_call_operand.vmem [shape: f32[32,1], index: 6, kind: input, shape index: {}]   ;;  %s1693_s7 = inlined_call_operand.vmem [shape: bf16[2,32], index: 7, kind: input, shape index: {}]   ;;  %s1694_s8 = inlined_call_operand.vmem [shape: f32[2,1], index: 8, kind: input, shape index: {}]   ;;  %s1695_s9 = inlined_call_operand.hbm [shape: f32[2,256], index: 9, kind: output, shape index: {}]  }
   0x1   :  { %16 = vsyncpa [#allocation3 + $0x1], 0  ;;  %s1411_s30 = smov 0   ;;  %s1413_s10 = smov 0  }
   0x2   :  { %s1415_s11 = smov 0   ;;  %s1417_s12 = smov 0  }
   0x3 LB: > { %s1432_s13 = sadd.s32 4294967295, %s1355_s12   ;;  %s1074_s14 = sadd.s32 4294967294, %s1355_s12   ;;  %s1355_s12 = sphi %s1417_s12, %s1701_s12   ;;  %s1351_s11 = sphi %s1415_s11, %s1700_s11   ;;  %s1347_s10 = sphi %s1413_s10, %s1699_s10   ;;  %s1343_s30 = sphi %s1411_s30, %s1698_s30  }
   0x4   : > { %s1436_s15 = sadd.s32 1, %s1355_s12   ;;  %s223_s16 = sadd.s32 1, %s1351_s11 }
   0x5   : > { %s220_s17 = ssub.s32 %s1355_s12, %s1436_s15  ;;  %p233_p0 = scmp.ne.s32.totalorder %s1351_s11, %s1347_s10 }
   0x6   : > { %p221_p1 = scmp.eq.s32.totalorder %s220_s17, 0  ;;  %p234_p2 = scmp.eq.s32.totalorder %s1432_s13, 1 }
   0x7   : > { %p239_p3 = scmp.ne.s32.totalorder %s1347_s10, %s1343_s30  ;;  %p240_p4 = scmp.eq.s32.totalorder %s1074_s14, 1 }
   0x8   : > { %s1447_s18 = scalar_select %p221_p1, %s1351_s11, %s223_s16  }
   0x9   : > { %p1449_p5 = por %p234_p2, %p233_p0  ;;  %p1453_p6 = por %p240_p4, %p239_p3 }
   0xa   : > { %p1077_p7 = scmp.ge.s32.totalorder %s1355_s12, 1  ;;  %p291_p8 = scmp.lt.s32.totalorder %s1355_s12, 3 }
   0xc   : > { %p292_p9 = pnand %p1077_p7, %p291_p8 }
   0xd   : > { %s1079_s21 = sshll.u32 (!%p292_p9), %s1432_s13, 4  ;;  %v1275_v0 = vld [vmem:[%s1687_s1] sm:$0xff] (!%p292_p9)   ;;  %vm510_vm0 = vcmask (!%p292_p9), 64512   ;;  %v1357_v1 = vmov (!%p292_p9), 0   ;;  %v376_v12 = vld [vmem:[%s1688_s2 + $0x10] sm:$0xff] (!%p292_p9)  ;;  %v375_v13 = vld [vmem:[%s1688_s2 + $0x8] sm:$0xff] (!%p292_p9) }
   0xe   : > { %295 = sbr.rel (%p292_p9) target bundleno = 1071 (0x42f), region = 56  ;;  %p328_p10 = scmp.lt.s32.totalorder (!%p292_p9), %s1079_s21, 31  ;;  %1163 = vmatprep.mubr.msk.bf16.mxu0 (!%p292_p9), %vm510_vm0, %v1275_v0  ;;  %1273 = vset.pattern.permute.xlu0 (!%p292_p9), %v1357_v1  ;;  %v374_v11 = vld [vmem:[%s1688_s2] sm:$0xff] (!%p292_p9)  ;;  %v377_v16 = vld [vmem:[%s1688_s2 + $0x18] sm:$0xff] (!%p292_p9)  ;;  %v379_v18 = vld [vmem:[%s1688_s2 + $0x28] sm:$0xff] (!%p292_p9)  ;;  %vm875_vm1 = vcmask (!%p292_p9), 523264  }
   0xf   : > { %1274 = vset.pattern.permute.xlu1 (!%p292_p9), %v1357_v1  ;;  %392 = vperm.xlu0 (!%p292_p9), %1273, %v374_v11   ;;  %v378_v17 = vld [vmem:[%s1688_s2 + $0x20] sm:$0xff] (!%p292_p9)  ;;  %v380_v21 = vld [vmem:[%s1688_s2 + $0x30] sm:$0xff] (!%p292_p9)  ;;  %v381_v23 = vld [vmem:[%s1688_s2 + $0x38] sm:$0xff] (!%p292_p9)  ;;  %vm1359_vm2 = vmmov (!%p292_p9), 0   ;;  %vm944_vm3 = vcmask (!%p292_p9), 261120   ;;  %s1107_s23 = sshll.u32 (!%p292_p9), %s1432_s13, 5 }
  0x10   : > { %402 = vperm.xlu1 (!%p292_p9), %1274, %v376_v12   ;;  %v382_v25 = vld [vmem:[%s1688_s2 + $0x40] sm:$0xff] (!%p292_p9)  ;;  %v383_v26 = vld [vmem:[%s1688_s2 + $0x48] sm:$0xff] (!%p292_p9)  ;;  %v384_v29 = vld [vmem:[%s1688_s2 + $0x50] sm:$0xff] (!%p292_p9)  ;;  %s1644_s29 = scalar_lea.hbm (!%p292_p9), %s1695_s9, %s1107_s23  ;;  %s1360_s13 = smov (!%p292_p9), [#allocation2]  }
  0x11   : > { %v385_v32 = vld [vmem:[%s1688_s2 + $0x58] sm:$0xff] (!%p292_p9)  ;;  %v386_v33 = vld [vmem:[%s1688_s2 + $0x60] sm:$0xff] (!%p292_p9)  ;;  %v387_v34 = vld [vmem:[%s1688_s2 + $0x68] sm:$0xff] (!%p292_p9)  ;;  %s1297_s17 = sshll.u32 (!%p292_p9), %s1360_s13, 4  ;;  %s1298_s17 = int_to_ptr.vmem [resolvable:$false] %s1297_s17 }
  0x12   : > { %v388_v37 = vld [vmem:[%s1688_s2 + $0x70] sm:$0xff] (!%p292_p9)  ;;  %v389_v40 = vld [vmem:[%s1688_s2 + $0x78] sm:$0xff] (!%p292_p9)  ;;  %v688_v41 = vld [vmem:[%s1690_s4] sm:$0xff] (!%p292_p9) }
  0x13   : > { %397 = vperm.xlu0 (!%p292_p9), %1273, %v375_v13   ;;  %v689_v42 = vld [vmem:[%s1690_s4 + $0x8] sm:$0xff] (!%p292_p9)  ;;  %v690_v45 = vld [vmem:[%s1690_s4 + $0x10] sm:$0xff] (!%p292_p9)  ;;  %v691_v48 = vld [vmem:[%s1690_s4 + $0x18] sm:$0xff] (!%p292_p9) }
  0x14   : > { %407 = vperm.xlu1 (!%p292_p9), %1274, %v377_v16   ;;  %v692_v49 = vld [vmem:[%s1690_s4 + $0x20] sm:$0xff] (!%p292_p9)  ;;  %v693_v50 = vld [vmem:[%s1690_s4 + $0x28] sm:$0xff] (!%p292_p9)  ;;  %v694_v53 = vld [vmem:[%s1690_s4 + $0x30] sm:$0xff] (!%p292_p9) }
  0x15   : > { %s1703_s21 = smov (!%p328_p10, %s1079_s21), 31  ;;  %v695_v56 = vld [vmem:[%s1690_s4 + $0x38] sm:$0xff]  ;;  %v841_v57 = vld [vmem:[%s1692_s6] sm:$0xff]  ;;  %v842_v58 = vld [vmem:[%s1692_s6 + $0x8] sm:$0xff] }
  0x16   : > { %s1080_s24 = sshll.u32 %s1703_s21, 3  ;;  %v843_v59 = vld [vmem:[%s1692_s6 + $0x10] sm:$0xff]  ;;  %v844_v61 = vld [vmem:[%s1692_s6 + $0x18] sm:$0xff]  ;;  %v938_v62 = vld [vmem:[%s1694_s8] sm:$0x3]  ;;  %s1299_s21 = scalar_lea.vmem %s1298_s17, 64 }
  0x17   : > { %s1467_s27 = scalar_lea.vmem %s1686_s0, %s1080_s24  ;;  %412 = vperm.xlu0 %1273, %v378_v17   ;;  %v1276_v63 = vld [vmem:[%s1687_s1 + $0x8] sm:$0xff]   ;;  %v1277_v0 = vld [vmem:[%s1687_s1 + $0x10] sm:$0xff]   ;;  %v1278_v1 = vld [vmem:[%s1687_s1 + $0x18] sm:$0xff]  }
  0x18   : > { %v334_v2 = vld [vmem:[%s1467_s27] sm:$0xff]  ;;  %v335_v3 = vld [vmem:[%s1467_s27 + $0x8] sm:$0xff]  ;;  %v336_v4 = vld [vmem:[%s1467_s27 + $0x10] sm:$0xff]  ;;  %417 = vperm.xlu1 %1274, %v379_v18  }
  0x19   : > { %v350_v5 = vpack.c.bf16 %v335_v3, %v334_v2  ;;  %v337_v6 = vld [vmem:[%s1467_s27 + $0x18] sm:$0xff]  ;;  %v338_v9 = vld [vmem:[%s1467_s27 + $0x20] sm:$0xff]  ;;  %v339_v10 = vld [vmem:[%s1467_s27 + $0x28] sm:$0xff] }
  0x1a   : > { %v351_v7 = vpack.c.bf16 %v337_v6, %v336_v4  ;;  %v352_v15 = vpack.c.bf16 %v339_v10, %v338_v9  ;;  %v340_v19 = vld [vmem:[%s1467_s27 + $0x30] sm:$0xff]  ;;  %v341_v20 = vld [vmem:[%s1467_s27 + $0x38] sm:$0xff]  ;;  %v342_v27 = vld [vmem:[%s1467_s27 + $0x40] sm:$0xff] }
  0x1b   : > { %1223 = vmatprep.subr.msk.bf16.mxu0 %vm510_vm0, %v350_v5  ;;  %v536_v8 = vsel %vm510_vm0, %v350_v5, 0  ;;  %v353_v24 = vpack.c.bf16 %v341_v20, %v340_v19  ;;  %422 = vperm.xlu0 %1273, %v380_v21   ;;  %v343_v28 = vld [vmem:[%s1467_s27 + $0x48] sm:$0xff]  ;;  %v344_v35 = vld [vmem:[%s1467_s27 + $0x50] sm:$0xff]  ;;  %v345_v36 = vld [vmem:[%s1467_s27 + $0x58] sm:$0xff] }
  0x1c   : > { %1148 = vmatpush3.bf16.xpose.msra.mxu0 %v536_v8  ;;  %v539_v14 = vsel %vm510_vm0, %v351_v7, 0  ;;  %v542_v22 = vsel %vm510_vm0, %v352_v15, 0  ;;  %427 = vperm.xlu1 %1274, %v381_v23   ;;  %v354_v31 = vpack.c.bf16 %v343_v28, %v342_v27  ;;  %v355_v39 = vpack.c.bf16 %v345_v36, %v344_v35  ;;  %v346_v43 = vld [vmem:[%s1467_s27 + $0x60] sm:$0xff]  ;;  %v347_v44 = vld [vmem:[%s1467_s27 + $0x68] sm:$0xff]  ;;  %v348_v51 = vld [vmem:[%s1467_s27 + $0x70] sm:$0xff] }
  0x1d   : > { %1224 = vmatprep.subr.msk.bf16.mxu0 %vm510_vm0, %v351_v7  ;;  %v545_v30 = vsel %vm510_vm0, %v353_v24, 0  ;;  %v356_v47 = vpack.c.bf16 %v347_v44, %v346_v43  ;;  %v349_v52 = vld [vmem:[%s1467_s27 + $0x78] sm:$0xff]  ;;  %v1279_v2 = vld [vmem:[%s1687_s1 + $0x20] sm:$0xff]   ;;  %v1280_v3 = vld [vmem:[%s1687_s1 + $0x28] sm:$0xff]   ;;  %s324_s27 = sand.u32 1, %s1347_s10  }
  0x1e   : > { %v548_v38 = vsel %vm510_vm0, %v354_v31, 0  ;;  %v551_v46 = vsel %vm510_vm0, %v355_v39, 0  ;;  %v357_v55 = vpack.c.bf16 %v349_v52, %v348_v51  ;;  %v1281_v4 = vld [vmem:[%s1687_s1 + $0x30] sm:$0xff]   ;;  %v1282_v5 = vld [vmem:[%s1687_s1 + $0x38] sm:$0xff]   ;;  %v1283_v6 = vld [vmem:[%s1689_s3] sm:$0xff]   ;;  %s1078_s22 = sshll.u32 %s324_s27, 1 }
  0x1f   : > { %432 = vperm.xlu0 %1273, %v382_v25   ;;  %v554_v54 = vsel %vm510_vm0, %v356_v47, 0  ;;  %1195 = vmatprep.mubr.bf16.mxu1 %v1283_v6  ;;  %s326_s24 = scalar_lea.vmem [#allocation2], %s1078_s22  ;;  %s1002_s14 = scalar_lea.sflag [#allocation3], %s324_s27 }
  0x20   : > { %437 = vperm.xlu1 %1274, %v383_v26   ;;  %v557_v60 = vsel %vm510_vm0, %v357_v55, 0  ;;  %s1015_s25 = sshll.u32 %s326_s24, 4  ;;  %s1646_s25 = int_to_ptr.vmem [resolvable:$true] %s1015_s25 }
  0x21   : > { %s1293_s16 = scalar_lea.vmem %s1646_s25, 32  ;;  %p1300_p0 = scmp.lt.s32.totalorder %s1646_s25, %s1298_s17 }
  0x22   : > { %p1294_p11 = scmp.ne.s32.totalorder %s1646_s25, %s1293_s16  ;;  %p1301_p1 = scmp.lt.s32.totalorder %s1299_s21, %s1293_s16 }
  0x23   : > { %442 = vperm.xlu0 %1273, %v384_v29  }
  0x24   : > { %1150 = vmatpush3.bf16.xpose.msra.mxu0 %v539_v14  ;;  %447 = vperm.xlu1 %1274, %v385_v32   ;;  %p1295_p12 = pnand %p1294_p11, %p1449_p5  ;;  %p1302_p2 = por %p1301_p1, %p1300_p0 }
  0x25   : > { %1225 = vmatprep.subr.msk.bf16.mxu0 %vm510_vm0, %v352_v15 }
  0x26   : > { %p1296_p13 = pneg %p1295_p12 }
  0x27   : > { %452 = vperm.xlu0 %1273, %v386_v33  }
  0x28   : > { %457 = vperm.xlu1 %1274, %v387_v34   ;;  %p1303_p3 = pnand %p1302_p2, %p1296_p13 }
  0x2b   : > { %462 = vperm.xlu0 %1273, %v388_v37  }
  0x2c   : > { %1152 = vmatpush3.bf16.xpose.msra.mxu0 %v542_v22  ;;  %467 = vperm.xlu1 %1274, %v389_v40  }
  0x2d   : > { %1226 = vmatprep.subr.msk.bf16.mxu0 %vm510_vm0, %v353_v24 }
  0x2f   : > { %698 = vperm.xlu0 %1273, %v688_v41  }
  0x30   : > { %703 = vperm.xlu1 %1274, %v689_v42  }
  0x33   : > { %708 = vperm.xlu0 %1273, %v690_v45  }
  0x34   : > { %1154 = vmatpush3.bf16.xpose.msra.mxu0 %v545_v30  ;;  %713 = vperm.xlu1 %1274, %v691_v48  }
  0x35   : > { %1227 = vmatprep.subr.msk.bf16.mxu0 %vm510_vm0, %v354_v31 }
  0x37   : > { %718 = vperm.xlu0 %1273, %v692_v49  }
  0x38   : > { %723 = vperm.xlu1 %1274, %v693_v50  }
  0x3b   : > { %728 = vperm.xlu0 %1273, %v694_v53  }
  0x3c   : > { %1156 = vmatpush3.bf16.xpose.msra.mxu0 %v548_v38  ;;  %733 = vperm.xlu1 %1274, %v695_v56  }
  0x3d   : > { %1228 = vmatprep.subr.msk.bf16.mxu0 %vm510_vm0, %v355_v39 }
  0x3f   : > { %847 = vperm.xlu0 %1273, %v841_v57  }
  0x40   : > { %852 = vperm.xlu1 %1274, %v842_v58  }
  0x43   : > { %857 = vperm.xlu0 %1273, %v843_v59  }
  0x44   : > { %1158 = vmatpush3.bf16.xpose.msra.mxu0 %v551_v46  ;;  %862 = vperm.xlu1 %1274, %v844_v61  }
  0x45   : > { %1229 = vmatprep.subr.msk.bf16.mxu0 %vm510_vm0, %v356_v47 }
  0x47   : > { %941 = vperm.xlu0 %1273, %v938_v62  }
  0x4c   : > { %1160 = vmatpush3.bf16.xpose.msra.mxu0 %v554_v54 }
  0x4d   : > { %1230 = vmatprep.subr.msk.bf16.mxu0 %vm510_vm0, %v357_v55 }
  0x54   : > { %1162 = vmatpush3.bf16.xpose.msra.mxu0 %v557_v60 }
  0x5b   : > { %1164 = vmatmul.mubr.msk.bf16.vlgmr.msra.gmra.mrb[0].mxu0 %vm510_vm0, %v1276_v63 }
  0x5c   : > { %1167 = vmatprep.mubr.msk.bf16.mxu0 %vm510_vm0, %v1277_v0 }
  0x63   : > { %1168 = vmatmul.mubr.msk.bf16.gmra.mrb[4].mxu0 %vm510_vm0, %v1278_v1 }
  0x64   : > { %1171 = vmatprep.mubr.msk.bf16.mxu0 %vm510_vm0, %v1279_v2 }
  0x6b   : > { %1172 = vmatmul.mubr.msk.bf16.gmra.mrb[8].mxu0 %vm510_vm0, %v1280_v3 }
  0x6c   : > { %1175 = vmatprep.mubr.msk.bf16.mxu0 %vm510_vm0, %v1281_v4 }
  0x73   : > { %1176 = vmatmul.mubr.msk.bf16.gmra.mrb[12].mxu0 %vm510_vm0, %v1282_v5 }
  0x8e   : > { %v393_v7 = vpop.permute.xlu0 %392 }
  0x8f   : > { %v403_v8 = vpop.permute.xlu1 %402 }
  0x92   : > { %v398_v9 = vpop.permute.xlu0 %397 }
  0x93   : > { %v408_v10 = vpop.permute.xlu1 %407 }
  0x96   : > { %v413_v11 = vpop.permute.xlu0 %412 }
  0x97   : > { %v418_v12 = vpop.permute.xlu1 %417 }
  0x9a   : > { %v423_v13 = vpop.permute.xlu0 %422 }
  0x9b   : > { %v428_v17 = vpop.permute.xlu1 %427 }
  0x9e   : > { %v433_v25 = vpop.permute.xlu0 %432 }
  0x9f   : > { %v438_v29 = vpop.permute.xlu1 %437 }
  0xa2   : > { %v443_v38 = vpop.permute.xlu0 %442 }
  0xa3   : > { %v448_v42 = vpop.permute.xlu1 %447 }
  0xa6   : > { %v453_v50 = vpop.permute.xlu0 %452 }
  0xa7   : > { %v458_v55 = vpop.permute.xlu1 %457 }
  0xaa   : > { %v463_v62 = vpop.permute.xlu0 %462 }
  0xab   : > { %v468_v3 = vpop.permute.xlu1 %467 }
 0x12e   : > { %v1165_v14 = vpop.f32.mrb[0].mxu0 }
 0x12f   : > { %v602_v15 = vadd.f32 %v1165_v14, %v403_v8  ;;  %v593_v16 = vpop.f32.mrb[1].mxu0 }
 0x130   : > { %v594_v18 = vadd.f32 %v593_v16, %v393_v7  ;;  %v1166_v19 = vpop.f32.mrb[2].mxu0  ;;  %v1285_v16 = vld [vmem:[%s1689_s3 + $0x10] sm:$0xff]  }
 0x131   : > { %v605_v20 = vadd.f32 %v1166_v19, %v408_v10  ;;  %v596_v21 = vpop.f32.mrb[3].mxu0  ;;  %v658_v23 = vmax.f32 %v602_v15, 0.0  ;;  %v1284_v15 = vld [vmem:[%s1689_s3 + $0x8] sm:$0xff]   ;;  %v699_v19 = vpop.permute.xlu0 %698 }
 0x132   : > { %v597_v22 = vadd.f32 %v596_v21, %v398_v9  ;;  %v656_v26 = vmax.f32 %v594_v18, 0.0  ;;  %v1287_v18 = vld [vmem:[%s1691_s5] sm:$0xff]  }
 0x133   : > { %v659_v24 = vmax.f32 %v605_v20, 0.0  ;;  %v704_v20 = vpop.permute.xlu1 %703 }
 0x134   : > { %v657_v27 = vmax.f32 %v597_v22, 0.0 }
 0x135   : > { %v681_v28 = vpack.c.bf16 %v659_v24, %v658_v23  ;;  %v709_v21 = vpop.permute.xlu0 %708 }
 0x136   : > { %v1169_v30 = vpop.f32.mrb[4].mxu0  ;;  %v680_v31 = vpack.c.bf16 %v657_v27, %v656_v26 }
 0x137   : > { %v618_v32 = vadd.f32 %v1169_v30, %v423_v13  ;;  %v609_v33 = vpop.f32.mrb[5].mxu0  ;;  %v714_v22 = vpop.permute.xlu1 %713 }
 0x138   : > { %v610_v34 = vadd.f32 %v609_v33, %v413_v11  ;;  %v1170_v35 = vpop.f32.mrb[6].mxu0  ;;  %1179 = vmatprep.subr.bf16.mxu1 %v680_v31 }
 0x139   : > { %v621_v36 = vadd.f32 %v1170_v35, %v428_v17  ;;  %v612_v37 = vpop.f32.mrb[7].mxu0  ;;  %1180 = vmatpush3.bf16.msra.mxu1 %v680_v31  ;;  %v662_v40 = vmax.f32 %v618_v32, 0.0  ;;  %v1286_v17 = vld [vmem:[%s1689_s3 + $0x18] sm:$0xff]   ;;  %v719_v26 = vpop.permute.xlu0 %718 }
 0x13a   : > { %v613_v39 = vadd.f32 %v612_v37, %v418_v12  ;;  %1181 = vmatprep.subr.bf16.mxu1 %v681_v28  ;;  %v660_v43 = vmax.f32 %v610_v34, 0.0 }
 0x13b   : > { %v663_v41 = vmax.f32 %v621_v36, 0.0  ;;  %v724_v31 = vpop.permute.xlu1 %723 }
 0x13c   : > { %v661_v44 = vmax.f32 %v613_v39, 0.0 }
 0x13d   : > { %v683_v45 = vpack.c.bf16 %v663_v41, %v662_v40  ;;  %1182 = vmatpush3.bf16.msra.mxu1 %v681_v28 }
 0x13e   : > { %v682_v46 = vpack.c.bf16 %v661_v44, %v660_v43  ;;  %v1173_v47 = vpop.f32.mrb[8].mxu0 }
 0x13f   : > { %v634_v48 = vadd.f32 %v1173_v47, %v443_v38  ;;  %v625_v49 = vpop.f32.mrb[9].mxu0  ;;  %v729_v38 = vpop.permute.xlu0 %728 }
 0x140   : > { %v626_v51 = vadd.f32 %v625_v49, %v433_v25  ;;  %v1174_v52 = vpop.f32.mrb[10].mxu0  ;;  %1183 = vmatprep.subr.bf16.mxu1 %v682_v46  ;;  %v734_v43 = vpop.permute.xlu1 %733 }
 0x141   : > { %v637_v53 = vadd.f32 %v1174_v52, %v448_v42  ;;  %v628_v54 = vpop.f32.mrb[11].mxu0  ;;  %1184 = vmatpush3.bf16.msra.mxu1 %v682_v46  ;;  %v666_v57 = vmax.f32 %v634_v48, 0.0 }
 0x142   : > { %v629_v56 = vadd.f32 %v628_v54, %v438_v29  ;;  %1185 = vmatprep.subr.bf16.mxu1 %v683_v45  ;;  %v664_v59 = vmax.f32 %v626_v51, 0.0 }
 0x143   : > { %v667_v58 = vmax.f32 %v637_v53, 0.0 }
 0x144   : > { %v665_v60 = vmax.f32 %v629_v56, 0.0  ;;  %v1358_v56 = vmov 0.0  }
 0x145   : > { %v685_v61 = vpack.c.bf16 %v667_v58, %v666_v57  ;;  %1186 = vmatpush3.bf16.msra.mxu1 %v683_v45  ;;  %v848_v57 = vpop.permute.xlu0 %847  ;;  %v853_v58 = vpop.permute.xlu1 %852 }
 0x146   : > { %v684_v63 = vpack.c.bf16 %v665_v60, %v664_v59  ;;  %v1177_v0 = vpop.f32.mrb[12].mxu0 }
 0x147   : > { %v650_v1 = vadd.f32 %v1177_v0, %v463_v62  ;;  %v641_v2 = vpop.f32.mrb[13].mxu0 }
 0x148   : > { %v642_v4 = vadd.f32 %v641_v2, %v453_v50  ;;  %v1178_v5 = vpop.f32.mrb[14].mxu0  ;;  %1187 = vmatprep.subr.bf16.mxu1 %v684_v63 }
 0x149   : > { %v653_v6 = vadd.f32 %v1178_v5, %v468_v3  ;;  %v644_v7 = vpop.f32.mrb[15].mxu0  ;;  %1188 = vmatpush3.bf16.msra.mxu1 %v684_v63  ;;  %v670_v9 = vmax.f32 %v650_v1, 0.0  ;;  %v858_v59 = vpop.permute.xlu0 %857 }
 0x14a   : > { %v645_v8 = vadd.f32 %v644_v7, %v458_v55  ;;  %1189 = vmatprep.subr.bf16.mxu1 %v685_v61  ;;  %v668_v11 = vmax.f32 %v642_v4, 0.0  ;;  %v1288_v55 = vld [vmem:[%s1691_s5 + $0x8] sm:$0xff]   ;;  %v863_v63 = vpop.permute.xlu1 %862 }
 0x14b   : > { %v671_v10 = vmax.f32 %v653_v6, 0.0 }
 0x14c   : > { %v669_v12 = vmax.f32 %v645_v8, 0.0 }
 0x14d   : > { %v687_v13 = vpack.c.bf16 %v671_v10, %v670_v9  ;;  %1190 = vmatpush3.bf16.msra.mxu1 %v685_v61 }
 0x14e   : > { %v686_v14 = vpack.c.bf16 %v669_v12, %v668_v11  ;;  %v935_v11 = vld [vmem:[%s1693_s7] sm:$0x1]  ;;  %v942_v12 = vpop.permute.xlu0 %941 }
 0x150   : > { %1191 = vmatprep.subr.bf16.mxu1 %v686_v14 }
 0x151   : > { %1192 = vmatpush3.bf16.msra.mxu1 %v686_v14 }
 0x152   : > { %1193 = vmatprep.subr.bf16.mxu1 %v687_v13 }
 0x155   : > { %1194 = vmatpush3.bf16.msra.mxu1 %v687_v13 }
 0x158   : > { %1196 = vmatmul.mubr.bf16.vlgmr.msra.gmra.mrb[0].mxu1 %v1284_v15 }
 0x159   : > { %1199 = vmatprep.mubr.bf16.mxu1 %v1285_v16 }
 0x160   : > { %1200 = vmatmul.mubr.bf16.gmra.mrb[4].mxu1 %v1286_v17 }
 0x161   : > { %1211 = vmatprep.mubr.msk.bf16.mxu1 %vm875_vm1, %v1287_v18 }
 0x22b   : > { %v1197_v23 = vpop.f32.mrb[0].mxu1 }
 0x22c   : > { %v803_v24 = vadd.f32 %v1197_v23, %v709_v21  ;;  %v794_v25 = vpop.f32.mrb[1].mxu1 }
 0x22d   : > { %v795_v27 = vadd.f32 %v794_v25, %v699_v19  ;;  %v1198_v28 = vpop.f32.mrb[2].mxu1 }
 0x22e   : > { %v806_v29 = vadd.f32 %v1198_v28, %v714_v22  ;;  %v797_v30 = vpop.f32.mrb[3].mxu1  ;;  %v827_v33 = vmax.f32 %v803_v24, 0.0 }
 0x22f   : > { %v798_v32 = vadd.f32 %v797_v30, %v704_v20  ;;  %v825_v35 = vmax.f32 %v795_v27, 0.0 }
 0x230   : > { %v828_v34 = vmax.f32 %v806_v29, 0.0 }
 0x231   : > { %v826_v36 = vmax.f32 %v798_v32, 0.0 }
 0x232   : > { %v838_v37 = vpack.c.bf16 %v828_v34, %v827_v33 }
 0x233   : > { %v837_v39 = vpack.c.bf16 %v826_v36, %v825_v35  ;;  %v1201_v40 = vpop.f32.mrb[4].mxu1 }
 0x234   : > { %v819_v41 = vadd.f32 %v1201_v40, %v729_v38  ;;  %v810_v42 = vpop.f32.mrb[5].mxu1 }
 0x235   : > { %v811_v44 = vadd.f32 %v810_v42, %v719_v26  ;;  %v1202_v45 = vpop.f32.mrb[6].mxu1  ;;  %1203 = vmatprep.subr.bf16.mxu1 %v837_v39 }
 0x236   : > { %v822_v46 = vadd.f32 %v1202_v45, %v734_v43  ;;  %v813_v47 = vpop.f32.mrb[7].mxu1  ;;  %1204 = vmatpush3.bf16.msra.mxu1 %v837_v39  ;;  %v831_v49 = vmax.f32 %v819_v41, 0.0 }
 0x237   : > { %v814_v48 = vadd.f32 %v813_v47, %v724_v31  ;;  %1205 = vmatprep.subr.bf16.mxu1 %v838_v37  ;;  %v829_v51 = vmax.f32 %v811_v44, 0.0 }
 0x238   : > { %v832_v50 = vmax.f32 %v822_v46, 0.0 }
 0x239   : > { %v830_v52 = vmax.f32 %v814_v48, 0.0 }
 0x23a   : > { %v840_v53 = vpack.c.bf16 %v832_v50, %v831_v49  ;;  %1206 = vmatpush3.bf16.msra.mxu1 %v838_v37 }
 0x23b   : > { %v839_v54 = vpack.c.bf16 %v830_v52, %v829_v51 }
 0x23d   : > { %1207 = vmatprep.subr.bf16.mxu1 %v839_v54 }
 0x23e   : > { %1208 = vmatpush3.bf16.msra.mxu1 %v839_v54 }
 0x23f   : > { %1209 = vmatprep.subr.bf16.mxu1 %v840_v53 }
 0x242   : > { %1210 = vmatpush3.bf16.msra.mxu1 %v840_v53 }
 0x243   : > { %1215 = vmatprep.subr.bf16.mxu1 %v1358_v56 }
 0x245   : > { %1212 = vmatmul.mubr.msk.bf16.vlgmr.msra.gmra.mrb[8].mxu1 %vm875_vm1, %v1288_v55 }
 0x246   : > { %1219 = vmatprep.mubr.msk.bf16.mxu1 %vm1359_vm2, %v1358_v56 }
 0x318   : > { %v1213_v60 = vpop.f32.mrb[8].mxu1 }
 0x319   : > { %v925_v61 = vadd.f32 %v1213_v60, %v858_v59  ;;  %v916_v62 = vpop.f32.mrb[9].mxu1 }
 0x31a   : > { %v917_v0 = vadd.f32 %v916_v62, %v848_v57  ;;  %v1214_v1 = vpop.f32.mrb[10].mxu1 }
 0x31b   : > { %v928_v2 = vadd.f32 %v1214_v1, %v863_v63  ;;  %v919_v3 = vpop.f32.mrb[11].mxu1  ;;  %v933_v5 = vmax.f32 %v925_v61, 0.0 }
 0x31c   : > { %v920_v4 = vadd.f32 %v919_v3, %v853_v58  ;;  %v931_v7 = vmax.f32 %v917_v0, 0.0 }
 0x31d   : > { %v934_v6 = vmax.f32 %v928_v2, 0.0 }
 0x31e   : > { %v932_v8 = vmax.f32 %v920_v4, 0.0 }
 0x31f   : > { %v937_v9 = vpack.c.bf16 %v934_v6, %v933_v5 }
 0x320   : > { %v936_v10 = vpack.c.bf16 %v932_v8, %v931_v7 }
 0x322   : > { %1216 = vmatpush3.bf16.msra.mxu1 %v936_v10 }
 0x323   : > { %1217 = vmatprep.subr.bf16.mxu1 %v1358_v56 }
 0x326   : > { %1218 = vmatpush3.bf16.msra.mxu1 %v937_v9 }
 0x329   : > { %1220 = vmatmul.mubr.msk.bf16.vlgmr.msra.gmra.mrb[12].mxu1 %vm944_vm3, %v935_v11 }
 0x3fc   : > { %v982_v13 = vpop.f32.mrb[12].mxu1 }
 0x3fd   : > { %v983_v14 = vadd.f32 %v982_v13, %v942_v12  ;;  %v1221_v15 = vpop.f32.mrb[13].mxu1 }
 0x3fe   : > { %v985_v16 = vpop.f32.mrb[14].mxu1 }
 0x3ff   : > { %v989_v17 = vrot.slane %v983_v14, 7  ;;  %v1222_v18 = vpop.f32.mrb[15].mxu1 }
 0x401   : > { %v991_v19 = vsub.f32 %v983_v14, %v989_v17 }
 0x403   : > { %v992_v20 = vsub.f32 0.0, %v991_v19 }
 0x405   : > { %v993_v21 = vmul.f32 1.442695, %v992_v20 }
 0x407   : > { %1289 = vpow2.f32 %v993_v21 }
 0x411   : > { %v1290_v22 = vpop.eup %1289 }
 0x412   : > { %v995_v23 = vadd.f32 1.0, %v1290_v22 }
 0x414   : > { %1291 = vrcp.f32 %v995_v23 }
 0x41e   : > { %v1292_v24 = vpop.eup %1291 }
 0x41f   : > { %v998_v25 = vsub.f32 1.0, %v1292_v24  ;;  %1000 = vst [vmem:[%s326_s24] sm:$0x2] %v1292_v24 }
 0x421   : > { %999 = vst [vmem:[%s326_s24 - $0x1] sm:$0x2] %v998_v25 }
 0x422   : > { %1306 = shalt.err (!%p1303_p3)
}
 0x423   : > { %s1307_s27 = scalar_lea.hbm %s1644_s29, 32  ;;  %s1311_s24 = scalar_lea.hbm %s1695_s9, 64 }
 0x424   : > { %p1308_p4 = scmp.ne.s32.totalorder %s1644_s29, %s1307_s27  ;;  %p1312_p9 = scmp.lt.u32.totalorder %s1644_s29, %s1695_s9 }
 0x425   : > { %p1313_p10 = scmp.lt.u32.totalorder %s1311_s24, %s1307_s27  ;;  %p1315_p12 = scmp.lt.u32.totalorder %s1307_s27, %s1644_s29 }
 0x426   : > { %p1309_p7 = pnand %p1308_p4, %p1449_p5 }
 0x427   : > { %p1314_p11 = por %p1313_p10, %p1312_p9 }
 0x428   : > { %p1310_p8 = pneg %p1309_p7 }
 0x429   : > { %p1316_p13 = por %p1315_p12, %p1314_p11 }
 0x42b   : > { %p1317_p0 = pnand %p1316_p13, %p1310_p8 }
 0x42d   : > { %1320 = shalt.err (!%p1317_p0)
}
 0x42e   : > { %1231 = dma.vmem_to_hbm [thread:$0]  (%p1449_p5), %s1646_s25, 32, %s1644_s29, %s1002_s14  }
 0x42f PF: > { %p1237_p1 = scmp.ge.s32.totalorder %s1355_s12, 2  ;;  %s1027_s16 = sand.u32 1, %s1343_s30  }
 0x430   : > { %s1028_s13 = scalar_lea.sflag [#allocation3], %s1027_s16 }
 0x431   : > { %p1234_p2 = pnand %p1237_p1, %p1453_p6 }
 0x433   : > { %1338 = dma.done.wait (!%p1234_p2), %s1028_s13, 32  }
 0x434   : > { %1340 = vsyncadd (!%p1234_p2), %s1028_s13, 4294967264  ;;  %p19_p3 = scmp.ge.s32.totalorder %s1436_s15, 4   ;;  %s1698_s30 = smov %s1347_s10 }
 0x435   : > { %s1699_s10 = smov %s1351_s11  ;;  %s1700_s11 = smov %s1447_s18 }
 0x436   : > { %s1701_s12 = smov %s1436_s15  ;;  %21 = sbr.rel (!%p19_p3) target bundleno = 3 (0x3), region = 91 }
 0x43d   :  { %1033 = vsyncpa [#allocation3], 1 }
 0x43e   :  { %1035 = vsyncpa [#allocation3 + $0x1], 1 }

</bundles_post_ra>
